<compile_context>
chip_gen: v6e
topology: v6e:2x2x1
jax: 0.10.0
libtpu: 0.0.40
codegen_flags: <defaults>
</compile_context>

<pallas_src>
import jax
import jax.numpy as jnp
from jax.experimental import pallas as pl
from jax.experimental.pallas import tpu as pltpu

IGNORE_INDEX = 255


def _ce2d_kernel(x_ref, t_ref, psum_ref, pcnt_ref):
    # x_ref:  (1, C, TS, 128) logits (f32 or bf16)
    # t_ref:  (1, TS, 128) int32 targets
    # psum_ref / pcnt_ref: (1, 1, TS, 128) f32 resident lane-wise accumulators
    j = pl.program_id(2)

    @pl.when(j == 0)
    def _():
        psum_ref[...] = jnp.zeros_like(psum_ref)
        pcnt_ref[...] = jnp.zeros_like(pcnt_ref)

    t = t_ref[0]                                   # (TS, 128) int32
    C = x_ref.shape[1]

    # Pass 1: running max over channels.  Per-channel (TS,128) slab reads,
    # cast per slab -> no full-block f32 materialisation.
    m = x_ref[0, 0].astype(jnp.float32)
    for c in range(1, C):
        m = jnp.maximum(m, x_ref[0, c].astype(jnp.float32))

    # Pass 2: exp-sum fused with the target-logit pick.  `t == c` is a single
    # VPU compare per channel; the (x_c - m) subtraction is shared between the
    # exp and the pick.
    esum = jnp.zeros_like(m)
    xtm = jnp.zeros_like(m)                        # x[target] - m (0 if t >= C)
    for c in range(C):
        d = x_ref[0, c].astype(jnp.float32) - m
        esum = esum + jnp.exp(d)
        xtm = xtm + jnp.where(t == c, d, 0.0)

    valid = t != IGNORE_INDEX                      # (TS, 128) bool
    # -log p(target) = (m + log(esum)) - (xtm + m) = log(esum) - xtm
    psum_ref[0, 0] += jnp.where(valid, jnp.log(esum) - xtm, 0.0)
    pcnt_ref[0, 0] += valid.astype(jnp.float32)


def _vmem_params(vmem_budget_bytes):
    """Per-generation pipeline budget + scoped VMEM limit."""
    try:
        phys = pltpu.get_tpu_info().vmem_capacity_bytes
    except Exception:
        phys = None
    if phys is None:
        phys = 64 << 20                      # assume smallest (v7x) if unknown
    if phys >= (100 << 20):
        # v5e / v6e: 128 MiB physical VMEM -> big tiles, raised scoped limit.
        budget, limit = 40 << 20, 100 << 20
    else:
        # v7x: 64 MiB physical -> keep double-buffered working set small.
        budget, limit = 20 << 20, 48 << 20
    if vmem_budget_bytes is not None:
        budget = vmem_budget_bytes
    return budget, limit


def _pick_tile_sub(n_sub, C, dtype_bytes, vmem_budget_bytes):
    """Largest sublane tile (rows of 128 pixels) whose working set fits budget.

    Per row of 128 pixels we account for:
      * double-buffered logits pipeline buffers   (2 * C * dtype_bytes)
      * double-buffered int32 target buffers      (2 * 4)
      * the two resident f32 accumulator blocks   (2 * 4, single-buffered)
      * ~6 f32 in-kernel temporaries (m, esum, xtm, d, valid, slack)
    """
    per_row = 128 * (2 * C * dtype_bytes + 2 * 4 + 2 * 4 + 6 * 4)
    cap = max(1, vmem_budget_bytes // per_row)
    if n_sub <= cap:
        return n_sub                 # whole sample; full-dim block is legal
    if n_sub % 8 != 0:
        # TODO(synk): masked remainder tile for n_sub not a multiple of 8.
        return n_sub
    best = 8                         # smallest legal tile (never exceeds cap
    d = 8                            # unless cap < 8, where it's the minimum)
    while d <= cap:
        if n_sub % d == 0:
            best = d
        d += 8
    return best


def cross_entropy_loss_2d(inputs, targets, *, vmem_budget_bytes=None):
    """inputs: (N, C, H, W) float (f32 or bf16); targets: (N, H, W) int.

    Returns the scalar mean cross-entropy over pixels whose target != 255
    (size_average=True, weight=None), matching CrossEntropyLoss2d.forward.
    """
    N, C, H, W = inputs.shape
    HW = H * W
    assert HW % 128 == 0, "H*W must be a multiple of 128"
    # TODO(synk): masked remainder tile for H*W not a multiple of 128.
    n_sub = HW // 128

    budget, vmem_limit = _vmem_params(vmem_budget_bytes)
    dtype_bytes = jnp.dtype(inputs.dtype).itemsize
    tp_sub = _pick_tile_sub(n_sub, C, dtype_bytes, budget)
    nb = n_sub // tp_sub

    # Extra outer *parallel* split of the pixel axis so both v7x TensorCores
    # stay busy when N is 1 / odd; harmless on single-TC v5e/v6e.
    ob_count = 2 if (N % 2 == 1 and nb % 2 == 0) else 1
    nbi = nb // ob_count

    # Zero-copy views (no transpose, no extra HBM traffic).
    x = inputs.reshape(N, C, n_sub, 128)
    t = targets.reshape(N, n_sub, 128)
    if t.dtype != jnp.int32:
        # TODO(synk): block uint8/int16 targets directly ((32,128) tiling).
        t = t.astype(jnp.int32)

    psum, pcnt = pl.pallas_call(
        _ce2d_kernel,
        out_shape=(
            jax.ShapeDtypeStruct((N, ob_count, tp_sub, 128), jnp.float32),
            jax.ShapeDtypeStruct((N, ob_count, tp_sub, 128), jnp.float32),
        ),
        grid_spec=pltpu.PrefetchScalarGridSpec(
            num_scalar_prefetch=0,
            grid=(N, ob_count, nbi),
            in_specs=[
                # Note: pipeline_mode=pl.Buffered(3) on the logits spec can
                # hide the C-way strided DMA latency on v5e/v6e if xprof shows
                # exposed gaps; not applied by default (no headroom on v7x).
                pl.BlockSpec((1, C, tp_sub, 128),
                             lambda n, ob, j: (n, 0, ob * nbi + j, 0)),
                pl.BlockSpec((1, tp_sub, 128),
                             lambda n, ob, j: (n, ob * nbi + j, 0)),
            ],
            out_specs=[
                pl.BlockSpec((1, 1, tp_sub, 128),
                             lambda n, ob, j: (n, ob, 0, 0)),
                pl.BlockSpec((1, 1, tp_sub, 128),
                             lambda n, ob, j: (n, ob, 0, 0)),
            ],
        ),
        compiler_params=pltpu.CompilerParams(
            dimension_semantics=("parallel", "parallel", "arbitrary"),
            vmem_limit_bytes=vmem_limit),
    )(x, t)

    # Tiny final cross-lane reduction + mean over valid pixels.
    return jnp.sum(psum) / jnp.sum(pcnt)


def _reference(inputs, targets):
    # Pure-JAX reference of F.log_softmax(dim=1) + NLLLoss2d(ignore_index=255, mean)
    logp = jax.nn.log_softmax(inputs.astype(jnp.float32), axis=1)  # (N,C,H,W)
    t = targets.astype(jnp.int32)
    valid = t != IGNORE_INDEX
    t_safe = jnp.where(valid, t, 0)
    picked = jnp.take_along_axis(logp, t_safe[:, None, :, :], axis=1)[:, 0]
    losses = jnp.where(valid, -picked, 0.0)
    return jnp.sum(losses) / jnp.sum(valid.astype(jnp.float32))


def _make_case(key, N, C, H, W, dtype):
    k1, k2, k3 = jax.random.split(key, 3)
    inputs = jax.random.normal(k1, (N, C, H, W), dtype=jnp.float32).astype(dtype)
    targets = jax.random.randint(k2, (N, H, W), 0, C, dtype=jnp.int32)
    ignore_mask = jax.random.uniform(k3, (N, H, W)) < 0.1
    targets = jnp.where(ignore_mask, IGNORE_INDEX, targets)
    return inputs, targets


if __name__ == "__main__":
    key = jax.random.PRNGKey(0)
    kA, kB = jax.random.split(key, 2)

    # Case 1: small, single tile per sample (N even -> no extra pixel split).
    inputs, targets = _make_case(kA, N=2, C=4, H=16, W=16, dtype=jnp.float32)
    loss = cross_entropy_loss_2d(inputs, targets)
    jax.block_until_ready(loss)
    ref = _reference(inputs, targets)
    assert jnp.allclose(loss, ref, atol=1e-5, rtol=1e-5), (loss, ref)

    # Case 2: odd N + tiny budget -> exercises multi-tile accumulation and the
    # extra parallel pixel-axis split (grid = (1, 2, 2), tp_sub = 8).
    inputs2, targets2 = _make_case(kB, N=1, C=3, H=64, W=64, dtype=jnp.float32)
    loss2 = cross_entropy_loss_2d(inputs2, targets2, vmem_budget_bytes=100_000)
    jax.block_until_ready(loss2)
    ref2 = _reference(inputs2, targets2)
    assert jnp.allclose(loss2, ref2, atol=1e-5, rtol=1e-5), (loss2, ref2)

    print("KERNEL_OK")
</pallas_src>

<mosaic_0001>
module attributes {stable_mosaic.version = 11 : i64} {
  func.func @_ce2d_kernel(%arg0: i32, %arg1: i32, %arg2: i32, %arg3: memref<1x4x2x128xf32, #tpu.memory_space<vmem>>, %arg4: memref<1x2x128xi32, #tpu.memory_space<vmem>>, %arg5: memref<1x1x2x128xf32, #tpu.memory_space<vmem>>, %arg6: memref<1x1x2x128xf32, #tpu.memory_space<vmem>>) attributes {dimension_semantics = [#tpu.dimension_semantics<parallel>, #tpu.dimension_semantics<parallel>, #tpu.dimension_semantics<arbitrary>], iteration_bounds = array<i64: 2, 1, 1>, scalar_prefetch = 0 : i64, scratch_operands = 0 : i64, tpu.core_type = #tpu.core_type<tc>, window_params = [{transform_indices = @transform_0, window_bounds = array<i64: 1, 4, 2, 128>}, {transform_indices = @transform_1, window_bounds = array<i64: 1, 2, 128>}, {transform_indices = @transform_2, window_bounds = array<i64: 1, 1, 2, 128>}, {transform_indices = @transform_3, window_bounds = array<i64: 1, 1, 2, 128>}]} {
    %c0_i32 = arith.constant 0 : i32
    %0 = arith.cmpi eq, %arg2, %c0_i32 : i32
    %1 = arith.extui %0 : i1 to i32
    %c0_i32_0 = arith.constant 0 : i32
    %2 = arith.cmpi ne, %1, %c0_i32_0 : i32
    scf.if %2 {
      %cst_55 = arith.constant 0.000000e+00 : f32
      %78 = vector.broadcast %cst_55 : f32 to vector<1x1x2x128xf32>
      %c0_56 = arith.constant 0 : index
      %c0_57 = arith.constant 0 : index
      %c0_58 = arith.constant 0 : index
      %c0_59 = arith.constant 0 : index
      %79 = vector.load %arg5[%c0_56, %c0_57, %c0_58, %c0_59] : memref<1x1x2x128xf32, #tpu.memory_space<vmem>>, vector<1x1x2x128xf32>
      tpu.vector_store %arg5[%c0_56, %c0_57, %c0_58, %c0_59], %78 {strides = array<i32>} : memref<1x1x2x128xf32, #tpu.memory_space<vmem>>, vector<1x1x2x128xf32>,
      %cst_60 = arith.constant 0.000000e+00 : f32
      %80 = vector.broadcast %cst_60 : f32 to vector<1x1x2x128xf32>
      %c0_61 = arith.constant 0 : index
      %c0_62 = arith.constant 0 : index
      %c0_63 = arith.constant 0 : index
      %c0_64 = arith.constant 0 : index
      %81 = vector.load %arg6[%c0_61, %c0_62, %c0_63, %c0_64] : memref<1x1x2x128xf32, #tpu.memory_space<vmem>>, vector<1x1x2x128xf32>
      tpu.vector_store %arg6[%c0_61, %c0_62, %c0_63, %c0_64], %80 {strides = array<i32>} : memref<1x1x2x128xf32, #tpu.memory_space<vmem>>, vector<1x1x2x128xf32>,
    } else {
    }
    %c0 = arith.constant 0 : index
    %c0_1 = arith.constant 0 : index
    %c0_2 = arith.constant 0 : index
    %3 = vector.load %arg4[%c0, %c0_1, %c0_2] : memref<1x2x128xi32, #tpu.memory_space<vmem>>, vector<1x2x128xi32>
    %4 = vector.shape_cast %3 : vector<1x2x128xi32> to vector<2x128xi32>
    %c0_3 = arith.constant 0 : index
    %c0_4 = arith.constant 0 : index
    %c0_5 = arith.constant 0 : index
    %c0_6 = arith.constant 0 : index
    %5 = vector.load %arg3[%c0_3, %c0_4, %c0_5, %c0_6] : memref<1x4x2x128xf32, #tpu.memory_space<vmem>>, vector<1x1x2x128xf32>
    %6 = vector.shape_cast %5 : vector<1x1x2x128xf32> to vector<2x128xf32>
    %c0_7 = arith.constant 0 : index
    %c1 = arith.constant 1 : index
    %c0_8 = arith.constant 0 : index
    %c0_9 = arith.constant 0 : index
    %7 = vector.load %arg3[%c0_7, %c1, %c0_8, %c0_9] : memref<1x4x2x128xf32, #tpu.memory_space<vmem>>, vector<1x1x2x128xf32>
    %8 = vector.shape_cast %7 : vector<1x1x2x128xf32> to vector<2x128xf32>
    %9 = arith.maximumf %6, %8 : vector<2x128xf32>
    %c0_10 = arith.constant 0 : index
    %c2 = arith.constant 2 : index
    %c0_11 = arith.constant 0 : index
    %c0_12 = arith.constant 0 : index
    %10 = vector.load %arg3[%c0_10, %c2, %c0_11, %c0_12] : memref<1x4x2x128xf32, #tpu.memory_space<vmem>>, vector<1x1x2x128xf32>
    %11 = vector.shape_cast %10 : vector<1x1x2x128xf32> to vector<2x128xf32>
    %12 = arith.maximumf %9, %11 : vector<2x128xf32>
    %c0_13 = arith.constant 0 : index
    %c3 = arith.constant 3 : index
    %c0_14 = arith.constant 0 : index
    %c0_15 = arith.constant 0 : index
    %13 = vector.load %arg3[%c0_13, %c3, %c0_14, %c0_15] : memref<1x4x2x128xf32, #tpu.memory_space<vmem>>, vector<1x1x2x128xf32>
    %14 = vector.shape_cast %13 : vector<1x1x2x128xf32> to vector<2x128xf32>
    %15 = arith.maximumf %12, %14 : vector<2x128xf32>
    %cst = arith.constant 0.000000e+00 : f32
    %16 = vector.broadcast %cst : f32 to vector<2x128xf32>
    %cst_16 = arith.constant 0.000000e+00 : f32
    %17 = vector.broadcast %cst_16 : f32 to vector<2x128xf32>
    %c0_17 = arith.constant 0 : index
    %c0_18 = arith.constant 0 : index
    %c0_19 = arith.constant 0 : index
    %c0_20 = arith.constant 0 : index
    %18 = vector.load %arg3[%c0_17, %c0_18, %c0_19, %c0_20] : memref<1x4x2x128xf32, #tpu.memory_space<vmem>>, vector<1x1x2x128xf32>
    %19 = vector.shape_cast %18 : vector<1x1x2x128xf32> to vector<2x128xf32>
    %20 = arith.subf %19, %15 : vector<2x128xf32>
    %21 = math.exp %20 : vector<2x128xf32>
    %22 = arith.addf %16, %21 : vector<2x128xf32>
    %c0_i32_21 = arith.constant 0 : i32
    %23 = vector.broadcast %c0_i32_21 : i32 to vector<2x128xi32>
    %24 = arith.cmpi eq, %4, %23 : vector<2x128xi32>
    %cst_22 = arith.constant 0.000000e+00 : f32
    %25 = vector.broadcast %cst_22 : f32 to vector<2x128xf32>
    %26 = arith.select %24, %20, %25 : vector<2x128xi1>, vector<2x128xf32>
    %27 = arith.addf %17, %26 : vector<2x128xf32>
    %c0_23 = arith.constant 0 : index
    %c1_24 = arith.constant 1 : index
    %c0_25 = arith.constant 0 : index
    %c0_26 = arith.constant 0 : index
    %28 = vector.load %arg3[%c0_23, %c1_24, %c0_25, %c0_26] : memref<1x4x2x128xf32, #tpu.memory_space<vmem>>, vector<1x1x2x128xf32>
    %29 = vector.shape_cast %28 : vector<1x1x2x128xf32> to vector<2x128xf32>
    %30 = arith.subf %29, %15 : vector<2x128xf32>
    %31 = math.exp %30 : vector<2x128xf32>
    %32 = arith.addf %22, %31 : vector<2x128xf32>
    %c1_i32 = arith.constant 1 : i32
    %33 = vector.broadcast %c1_i32 : i32 to vector<2x128xi32>
    %34 = arith.cmpi eq, %4, %33 : vector<2x128xi32>
    %cst_27 = arith.constant 0.000000e+00 : f32
    %35 = vector.broadcast %cst_27 : f32 to vector<2x128xf32>
    %36 = arith.select %34, %30, %35 : vector<2x128xi1>, vector<2x128xf32>
    %37 = arith.addf %27, %36 : vector<2x128xf32>
    %c0_28 = arith.constant 0 : index
    %c2_29 = arith.constant 2 : index
    %c0_30 = arith.constant 0 : index
    %c0_31 = arith.constant 0 : index
    %38 = vector.load %arg3[%c0_28, %c2_29, %c0_30, %c0_31] : memref<1x4x2x128xf32, #tpu.memory_space<vmem>>, vector<1x1x2x128xf32>
    %39 = vector.shape_cast %38 : vector<1x1x2x128xf32> to vector<2x128xf32>
    %40 = arith.subf %39, %15 : vector<2x128xf32>
    %41 = math.exp %40 : vector<2x128xf32>
    %42 = arith.addf %32, %41 : vector<2x128xf32>
    %c2_i32 = arith.constant 2 : i32
    %43 = vector.broadcast %c2_i32 : i32 to vector<2x128xi32>
    %44 = arith.cmpi eq, %4, %43 : vector<2x128xi32>
    %cst_32 = arith.constant 0.000000e+00 : f32
    %45 = vector.broadcast %cst_32 : f32 to vector<2x128xf32>
    %46 = arith.select %44, %40, %45 : vector<2x128xi1>, vector<2x128xf32>
    %47 = arith.addf %37, %46 : vector<2x128xf32>
    %c0_33 = arith.constant 0 : index
    %c3_34 = arith.constant 3 : index
    %c0_35 = arith.constant 0 : index
    %c0_36 = arith.constant 0 : index
    %48 = vector.load %arg3[%c0_33, %c3_34, %c0_35, %c0_36] : memref<1x4x2x128xf32, #tpu.memory_space<vmem>>, vector<1x1x2x128xf32>
    %49 = vector.shape_cast %48 : vector<1x1x2x128xf32> to vector<2x128xf32>
    %50 = arith.subf %49, %15 : vector<2x128xf32>
    %51 = math.exp %50 : vector<2x128xf32>
    %52 = arith.addf %42, %51 : vector<2x128xf32>
    %c3_i32 = arith.constant 3 : i32
    %53 = vector.broadcast %c3_i32 : i32 to vector<2x128xi32>
    %54 = arith.cmpi eq, %4, %53 : vector<2x128xi32>
    %cst_37 = arith.constant 0.000000e+00 : f32
    %55 = vector.broadcast %cst_37 : f32 to vector<2x128xf32>
    %56 = arith.select %54, %50, %55 : vector<2x128xi1>, vector<2x128xf32>
    %57 = arith.addf %47, %56 : vector<2x128xf32>
    %c255_i32 = arith.constant 255 : i32
    %58 = vector.broadcast %c255_i32 : i32 to vector<2x128xi32>
    %59 = arith.cmpi ne, %4, %58 : vector<2x128xi32>
    %c0_38 = arith.constant 0 : index
    %c0_39 = arith.constant 0 : index
    %c0_40 = arith.constant 0 : index
    %c0_41 = arith.constant 0 : index
    %60 = vector.load %arg5[%c0_38, %c0_39, %c0_40, %c0_41] : memref<1x1x2x128xf32, #tpu.memory_space<vmem>>, vector<1x1x2x128xf32>
    %61 = vector.shape_cast %60 : vector<1x1x2x128xf32> to vector<2x128xf32>
    %62 = math.log %52 : vector<2x128xf32>
    %63 = arith.subf %62, %57 : vector<2x128xf32>
    %cst_42 = arith.constant 0.000000e+00 : f32
    %64 = vector.broadcast %cst_42 : f32 to vector<2x128xf32>
    %65 = arith.select %59, %63, %64 : vector<2x128xi1>, vector<2x128xf32>
    %66 = arith.addf %61, %65 : vector<2x128xf32>
    %c0_43 = arith.constant 0 : index
    %c0_44 = arith.constant 0 : index
    %c0_45 = arith.constant 0 : index
    %c0_46 = arith.constant 0 : index
    %67 = vector.load %arg5[%c0_43, %c0_44, %c0_45, %c0_46] : memref<1x1x2x128xf32, #tpu.memory_space<vmem>>, vector<1x1x2x128xf32>
    %68 = vector.shape_cast %67 : vector<1x1x2x128xf32> to vector<2x128xf32>
    %69 = vector.shape_cast %66 : vector<2x128xf32> to vector<1x1x2x128xf32>
    tpu.vector_store %arg5[%c0_43, %c0_44, %c0_45, %c0_46], %69 {strides = array<i32>} : memref<1x1x2x128xf32, #tpu.memory_space<vmem>>, vector<1x1x2x128xf32>,
    %c0_47 = arith.constant 0 : index
    %c0_48 = arith.constant 0 : index
    %c0_49 = arith.constant 0 : index
    %c0_50 = arith.constant 0 : index
    %70 = vector.load %arg6[%c0_47, %c0_48, %c0_49, %c0_50] : memref<1x1x2x128xf32, #tpu.memory_space<vmem>>, vector<1x1x2x128xf32>
    %71 = vector.shape_cast %70 : vector<1x1x2x128xf32> to vector<2x128xf32>
    %72 = arith.extui %59 : vector<2x128xi1> to vector<2x128xi32>
    %73 = arith.sitofp %72 : vector<2x128xi32> to vector<2x128xf32>
    %74 = arith.addf %71, %73 : vector<2x128xf32>
    %c0_51 = arith.constant 0 : index
    %c0_52 = arith.constant 0 : index
    %c0_53 = arith.constant 0 : index
    %c0_54 = arith.constant 0 : index
    %75 = vector.load %arg6[%c0_51, %c0_52, %c0_53, %c0_54] : memref<1x1x2x128xf32, #tpu.memory_space<vmem>>, vector<1x1x2x128xf32>
    %76 = vector.shape_cast %75 : vector<1x1x2x128xf32> to vector<2x128xf32>
    %77 = vector.shape_cast %74 : vector<2x128xf32> to vector<1x1x2x128xf32>
    tpu.vector_store %arg6[%c0_51, %c0_52, %c0_53, %c0_54], %77 {strides = array<i32>} : memref<1x1x2x128xf32, #tpu.memory_space<vmem>>, vector<1x1x2x128xf32>,
    return
  }
  func.func @transform_0(%arg0: i32, %arg1: i32, %arg2: i32) -> (i32, i32, i32, i32) {
    %c1_i32 = arith.constant 1 : i32
    %0 = arith.muli %arg1, %c1_i32 : i32
    %1 = arith.addi %0, %arg2 : i32
    %c0_i32 = arith.constant 0 : i32
    %c0_i32_0 = arith.constant 0 : i32
    %c0_i32_1 = arith.constant 0 : i32
    return %arg0, %c0_i32, %1, %c0_i32_0 : i32, i32, i32, i32
  }
  func.func @transform_1(%arg0: i32, %arg1: i32, %arg2: i32) -> (i32, i32, i32) {
    %c1_i32 = arith.constant 1 : i32
    %0 = arith.muli %arg1, %c1_i32 : i32
    %1 = arith.addi %0, %arg2 : i32
    %c0_i32 = arith.constant 0 : i32
    %c0_i32_0 = arith.constant 0 : i32
    return %arg0, %1, %c0_i32 : i32, i32, i32
  }
  func.func @transform_2(%arg0: i32, %arg1: i32, %arg2: i32) -> (i32, i32, i32, i32) {
    %c0_i32 = arith.constant 0 : i32
    %c0_i32_0 = arith.constant 0 : i32
    %c0_i32_1 = arith.constant 0 : i32
    return %arg0, %arg1, %c0_i32, %c0_i32_0 : i32, i32, i32, i32
  }
  func.func @transform_3(%arg0: i32, %arg1: i32, %arg2: i32) -> (i32, i32, i32, i32) {
    %c0_i32 = arith.constant 0 : i32
    %c0_i32_0 = arith.constant 0 : i32
    %c0_i32_1 = arith.constant 0 : i32
    return %arg0, %arg1, %c0_i32, %c0_i32_0 : i32, i32, i32, i32
  }
}

</mosaic_0001>

<bundles_post_ra>
// kernel: tpu_custom_call.1
= control target key start
LH: loop header
LB: loop body
LE: loop exit
PB: predicated region body
PF: predicated region fallthrough
CT: control target
= control target key end

     0   :  { %s1029_s0 = inlined_call_operand.hbm [shape: f32[2,4,2,128], index: 0, kind: input, shape index: {}]   ;;  %s1030_s1 = inlined_call_operand.hbm [shape: s32[2,2,128], index: 1, kind: input, shape index: {}]   ;;  %s1031_s2 = inlined_call_operand.hbm [shape: f32[2,1,2,128], index: 2, kind: output, shape index: {0}]   ;;  %s1032_s3 = inlined_call_operand.hbm [shape: f32[2,1,2,128], index: 3, kind: output, shape index: {1}]  }
   0x1   :  { %1033 = sst [smem:[#allocation14_spill]] %s1029_s0 }
   0x2   :  { %9 = vsyncpa [#allocation3], 0 }
   0x3   :  { %11 = vsyncpa [#allocation3 + $0x1], 0 }
   0x4   :  { %12 = vsyncpa [#allocation6], 0 }
   0x5   :  { %14 = vsyncpa [#allocation6 + $0x1], 0 }
   0x6   :  { %15 = vsyncpa [#allocation4], 0 }
   0x7   :  { %17 = vsyncpa [#allocation4 + $0x1], 0 }
   0x8   :  { %18 = vsyncpa [#allocation9], 0 }
   0x9   :  { %20 = vsyncpa [#allocation9 + $0x1], 0  ;;  %s818_s12 = smov 0   ;;  %s820_s13 = smov 0  }
   0xa   :  { %s822_s14 = smov 0   ;;  %s824_s15 = smov 0  }
   0xb   :  { %s826_s16 = smov 0   ;;  %s828_s17 = smov 0  }
   0xc LB: > { %s509_s18 = sadd.s32 4294967295, %s789_s17   ;;  %s510_s19 = sadd.s32 4294967294, %s789_s17   ;;  %s789_s17 = sphi %s828_s17, %s26_s17   ;;  %s785_s16 = sphi %s826_s16, %s1046_s16   ;;  %s781_s15 = sphi %s824_s15, %s1045_s15   ;;  %s777_s14 = sphi %s822_s14, %s1044_s14   ;;  %s773_s13 = sphi %s820_s13, %s1043_s13   ;;  %s769_s12 = sphi %s818_s12, %s1042_s12  }
   0xd   : > { %s45_s20 = sadd.s32 1, %s785_s16  ;;  %s56_s21 = sadd.s32 1, %s777_s14 }
   0xe   : > { %p47_p0 = scmp.ge.s32.totalorder %s45_s20, 2  ;;  %p63_p1 = scmp.ne.s32.totalorder %s777_s14, %s773_s13 }
   0xf   : > { %p64_p2 = scmp.eq.s32.totalorder %s789_s17, 0  ;;  %p69_p3 = scmp.ne.s32.totalorder %s773_s13, %s769_s12 }
  0x10   : > { %s1048_s20 = smov (%p47_p0, %s45_s20), 0  ;;  %p70_p5 = scmp.eq.s32.totalorder %s509_s18, 0 }
  0x11   : > { %p859_p4 = por %p64_p2, %p63_p1  ;;  %s51_s23 = ssub.s32 %s785_s16, %s1048_s20 }
  0x12   : > { %p125_p6 = scmp.eq.s32.totalorder %s509_s18, 1  ;;  %p54_p7 = scmp.eq.s32.totalorder %s51_s23, 0 }
  0x13   : > { %p865_p8 = por %p70_p5, %p69_p3  ;;  %p131_p10 = scmp.eq.s32.totalorder %s510_s19, 1 }
  0x14   : > { %p869_p9 = por %p125_p6, %p63_p1  ;;  %p556_p13 = scmp.lt.s32.totalorder %s789_s17, 2 }
  0x15   : > { %s874_s26 = scalar_select %p54_p7, %s777_s14, %s56_s21  }
  0x16   : > { %p876_p11 = por %p131_p10, %p69_p3  ;;  %s883_s28 = sand.u32 1, %s777_s14  }
  0x17   : > { %s513_s29 = sshll.u32 %s883_s28, 3  ;;  %s533_s30 = sshll.u32 %s785_s16, 7 }
  0x18   : > { %s1038_s0 = sld [smem:[#allocation14_spill]]  ;;  %s183_s7 = scalar_lea.vmem [#allocation2], %s513_s29 }
  0x19   : > { %s192_s8 = sshll.u32 %s183_s7, 4  ;;  %p892_p0 = pnand %p556_p13, %p859_p4  ;;  %s193_s8 = int_to_ptr.vmem [resolvable:$true] %s192_s8 }
  0x1a   : > { %p518_p1 = scmp.ge.s32.totalorder %s789_s17, 1  ;;  %s180_s10 = scalar_lea.sflag [#allocation3], %s883_s28 }
  0x1b   : > { %p621_p2 = pneg %p892_p0  ;;  %s632_s11 = scalar_lea.vmem %s193_s8, 128 }
  0x1c   : > { %p633_p3 = scmp.ne.s32.totalorder %s193_s8, %s632_s11  ;;  %s791_s18 = smov [#allocation2]  }
  0x1d   : > { %s637_s19 = sshll.u32 %s791_s18, 4  ;;  %s638_s19 = int_to_ptr.vmem [resolvable:$false] %s637_s19 }
  0x1e   : > { %s191_s6 = scalar_lea.hbm %s1038_s0, %s533_s30  ;;  %p635_p5 = pnand %p633_p3, %p621_p2 }
  0x1f   : > { %s639_s21 = scalar_lea.vmem %s638_s19, 256  ;;  %p640_p4 = scmp.lt.s32.totalorder %s193_s8, %s638_s19 }
  0x20   : > { %p636_p6 = pneg %p635_p5  ;;  %p641_p7 = scmp.lt.s32.totalorder %s639_s21, %s632_s11 }
  0x22   : > { %p642_p10 = por %p641_p7, %p640_p4 }
  0x24   : > { %p643_p13 = pnand %p642_p10, %p636_p6 }
  0x26   : > { %646 = shalt.err (!%p643_p13)
}
  0x27   : > { %s792_s22 = smov 32   ;;  %s793_s23 = smov 2  }
  0x28   : > { %545 = dma.hbm_to_vmem [thread:$0]  (!%p892_p0), %s191_s6, 128, %s193_s8, %s180_s10, %s792_s22, %s792_s22, %s793_s23  }
  0x29   : > { %p220_p3 = scmp.lt.s32.totalorder %s789_s17, 3  ;;  %s516_s29 = sshll.u32 %s883_s28, 1 }
  0x2a   : > { %s517_s30 = sshll.u32 %s785_s16, 5  ;;  %s206_s18 = scalar_lea.vmem [#allocation5], %s516_s29 }
  0x2b   : > { %p910_p5 = pnand %p518_p1, %p220_p3  ;;  %s213_s11 = scalar_lea.hbm %s1030_s1, %s517_s30 }
  0x2c   : > { %s215_s19 = sshll.u32 %s206_s18, 4  ;;  %s203_s21 = scalar_lea.sflag [#allocation6], %s883_s28  ;;  %s216_s19 = int_to_ptr.vmem [resolvable:$true] %s215_s19 }
  0x2d   : > { %s660_s0 = scalar_lea.vmem %s216_s19, 32  ;;  %s794_s6 = smov [#allocation5]  }
  0x2e   : > { %p661_p6 = scmp.ne.s32.totalorder %s216_s19, %s660_s0  ;;  %s665_s8 = sshll.u32 %s794_s6, 4  ;;  %s666_s8 = int_to_ptr.vmem [resolvable:$false] %s665_s8 }
  0x2f   : > { %s667_s10 = scalar_lea.vmem %s666_s8, 64  ;;  %p668_p1 = scmp.lt.s32.totalorder %s216_s19, %s666_s8 }
  0x30   : > { %p663_p4 = pnand %p661_p6, %p621_p2  ;;  %p669_p10 = scmp.lt.s32.totalorder %s667_s10, %s660_s0 }
  0x32   : > { %p664_p7 = pneg %p663_p4  ;;  %p670_p13 = por %p669_p10, %p668_p1 }
  0x34   : > { %p671_p3 = pnand %p670_p13, %p664_p7 }
  0x36   : > { %674 = shalt.err (!%p671_p3)
}
  0x37   : > { %548 = dma.hbm_to_vmem [thread:$0]  (!%p892_p0), %s213_s11, 32, %s216_s19, %s203_s21  }
  0x38   : > { %224 = sbr.rel (%p910_p5) target bundleno = 146 (0x92), region = 28  ;;  %s926_s28 = sand.u32 (!%p910_p5), 1, %s773_s13  }
  0x39   : > { %s519_s22 = sshll.u32 (!%p910_p5), %s926_s28, 3  ;;  %s227_s23 = scalar_lea.sflag (!%p910_p5), [#allocation3], %s926_s28 }
  0x3a   : > { %s230_s29 = scalar_lea.vmem (!%p910_p5), [#allocation2], %s519_s22 }
  0x3d   : > { %752 = dma.done.wait (%p865_p8), %s227_s23, 128  }
  0x3e   : > { %754 = vsyncadd (%p865_p8), %s227_s23, 4294967168  ;;  %s520_s0 = sshll.u32 %s926_s28, 1  ;;  %s236_s9 = scalar_lea.sflag [#allocation6], %s926_s28 }
  0x3f   : > { %s239_s30 = scalar_lea.vmem [#allocation5], %s520_s0 }
  0x40   : > { %756 = dma.done.wait (%p865_p8), %s236_s9, 32  }
  0x41   : > { %758 = vsyncadd (%p865_p8), %s236_s9, 4294967264  ;;  %s940_s4 = scalar_lea.vmem [#allocation7], %s520_s0  ;;  %v795_v0 = vmov 0.0   ;;  %s271_s5 = scalar_lea.vmem [#allocation8], %s520_s0  ;;  %v281_v1 = vld [vmem:[%s230_s29] sm:$0x3] }
  0x42   : > { %278 = vst [vmem:[%s940_s4] sm:$0x3] %v795_v0  ;;  %279 = vst [vmem:[%s271_s5] sm:$0x3] %v795_v0  ;;  %v523_v2 = vld [vmem:[%s230_s29 + $0x2] sm:$0x3]  ;;  %v943_v3 = vld [vmem:[%s239_s30] sm:$0x3] }
  0x43   : > { %v284_v4 = vmax.f32 %v281_v1, %v523_v2  ;;  %v524_v5 = vld [vmem:[%s230_s29 + $0x4] sm:$0x3]  ;;  %s529_s7 = sshll.u32 %s781_s15, 5  ;;  %s366_s11 = sshll.u32 %s271_s5, 4  ;;  %v525_v6 = vld [vmem:[%s230_s29 + $0x6] sm:$0x3]  ;;  %s956_s11 = int_to_ptr.vmem [resolvable:$true] %s366_s11 }
  0x44   : > { %vm319_vm0 = vcmp.ne.s32.totalorder %v943_v3, 255  ;;  %s954_s19 = scalar_lea.hbm %s1032_s3, %s529_s7  ;;  %s338_s21 = scalar_lea.sflag [#allocation9], %s926_s28 }
  0x45   : > { %v287_v7 = vmax.f32 %v284_v4, %v524_v5  ;;  %v526_v8 = vsel %vm319_vm0, 1.0, %v795_v0  ;;  %s675_s6 = scalar_lea.vmem %s956_s11, 32  ;;  %s796_s8 = smov [#allocation8]  }
  0x46   : > { %p676_p8 = scmp.ne.s32.totalorder %s956_s11, %s675_s6  ;;  %s679_s10 = sshll.u32 %s796_s8, 4  ;;  %s680_s10 = int_to_ptr.vmem [resolvable:$false] %s679_s10 }
  0x47   : > { %v290_v11 = vmax.f32 %v287_v7, %v525_v6  ;;  %s681_s22 = scalar_lea.vmem %s680_s10, 64  ;;  %p682_p5 = scmp.lt.s32.totalorder %s956_s11, %s680_s10 }
  0x48   : > { %p677_p0 = pnand %p676_p8, %p869_p9  ;;  %p683_p6 = scmp.lt.s32.totalorder %s681_s22, %s675_s6 }
  0x49   : > { %v327_v9 = vld [vmem:[%s271_s5] sm:$0x3]  ;;  %v291_v12 = vsub.f32 %v281_v1, %v290_v11  ;;  %v298_v13 = vsub.f32 %v523_v2, %v290_v11  ;;  %v305_v14 = vsub.f32 %v524_v5, %v290_v11  ;;  %v312_v15 = vsub.f32 %v525_v6, %v290_v11 }
  0x4a   : > { %v330_v10 = vadd.f32 %v526_v8, %v327_v9  ;;  %p678_p2 = pneg %p677_p0  ;;  %p684_p4 = por %p683_p6, %p682_p5 }
  0x4c   : > { %331 = vst [vmem:[%s271_s5] sm:$0x3] %v330_v10  ;;  %p685_p7 = pnand %p684_p4, %p678_p2 }
  0x4e   : > { %688 = shalt.err (!%p685_p7)
}
  0x4f   : > { %s689_s23 = scalar_lea.hbm %s954_s19, 32  ;;  %s693_s9 = scalar_lea.hbm %s1032_s3, 64 }
  0x50   : > { %p690_p1 = scmp.ne.s32.totalorder %s954_s19, %s689_s23  ;;  %p694_p3 = scmp.lt.s32.totalorder %s954_s19, %s1032_s3 }
  0x51   : > { %p695_p8 = scmp.lt.s32.totalorder %s693_s9, %s689_s23 }
  0x52   : > { %p691_p10 = pnand %p690_p1, %p869_p9 }
  0x53   : > { %p696_p0 = por %p695_p8, %p694_p3 }
  0x54   : > { %p692_p13 = pneg %p691_p10 }
  0x56   : > { %p697_p2 = pnand %p696_p0, %p692_p13 }
  0x58   : > { %700 = shalt.err (!%p697_p2)
}
  0x59   : > { %539 = dma.vmem_to_hbm [thread:$0]  (%p869_p9), %s956_s11, 32, %s954_s19, %s338_s21   ;;  %v292_v16 = vmul.f32 1.442695, %v291_v12  ;;  %v299_v17 = vmul.f32 1.442695, %v298_v13  ;;  %vm295_vm1 = vcmp.eq.s32.totalorder %v943_v3, 0 }
  0x5a   : > { %v306_v18 = vmul.f32 1.442695, %v305_v14  ;;  %v313_v19 = vmul.f32 1.442695, %v312_v15  ;;  %vm302_vm2 = vcmp.eq.s32.totalorder %v943_v3, 1  ;;  %v296_v27 = vsel %vm295_vm1, %v291_v12, 0.0  ;;  %s350_s19 = scalar_lea.hbm %s1031_s2, %s529_s7 }
  0x5b   : > { %609 = vpow2.f32 %v292_v16  ;;  %v303_v28 = vsel %vm302_vm2, %v298_v13, 0.0  ;;  %vm309_vm3 = vcmp.eq.s32.totalorder %v943_v3, 2  ;;  %vm316_vm4 = vcmp.eq.s32.totalorder %v943_v3, 3  ;;  %v320_v37 = vld [vmem:[%s940_s4] sm:$0x3]  ;;  %s352_s11 = sshll.u32 %s940_s4, 4  ;;  %s353_s11 = int_to_ptr.vmem [resolvable:$true] %s352_s11 }
  0x5c   : > { %611 = vpow2.f32 %v299_v17  ;;  %v304_v29 = vadd.f32 %v303_v28, %v296_v27  ;;  %v310_v30 = vsel %vm309_vm3, %v305_v14, 0.0  ;;  %v317_v32 = vsel %vm316_vm4, %v312_v15, 0.0  ;;  %s333_s21 = scalar_lea.sflag [#allocation4], %s926_s28  ;;  %s701_s6 = scalar_lea.vmem %s353_s11, 32 }
  0x5d   : > { %613 = vpow2.f32 %v306_v18  ;;  %p702_p5 = scmp.ne.s32.totalorder %s353_s11, %s701_s6  ;;  %s797_s8 = smov [#allocation7]  }
  0x5e   : > { %615 = vpow2.f32 %v313_v19  ;;  %v311_v31 = vadd.f32 %v310_v30, %v304_v29  ;;  %s705_s10 = sshll.u32 %s797_s8, 4  ;;  %s706_s10 = int_to_ptr.vmem [resolvable:$false] %s705_s10 }
  0x5f   : > { %p703_p6 = pnand %p702_p5, %p869_p9  ;;  %s707_s22 = scalar_lea.vmem %s706_s10, 64 }
  0x60   : > { %v318_v33 = vadd.f32 %v317_v32, %v311_v31  ;;  %p708_p7 = scmp.lt.s32.totalorder %s353_s11, %s706_s10  ;;  %p709_p1 = scmp.lt.s32.totalorder %s707_s22, %s701_s6 }
  0x61   : > { %p704_p4 = pneg %p703_p6 }
  0x62   : > { %p710_p10 = por %p709_p1, %p708_p7 }
  0x64   : > { %p711_p13 = pnand %p710_p10, %p704_p4 }
  0x68   : > { %v610_v20 = vpop.eup %609 }
  0x69   : > { %v612_v21 = vpop.eup %611 }
  0x6a   : > { %v614_v22 = vpop.eup %613  ;;  %v301_v23 = vadd.f32 %v612_v21, %v610_v20 }
  0x6b   : > { %v616_v24 = vpop.eup %615 }
  0x6c   : > { %v308_v25 = vadd.f32 %v614_v22, %v301_v23 }
  0x6e   : > { %v315_v26 = vadd.f32 %v616_v24, %v308_v25 }
  0x70   : > { %617 = vlog2.f32 %v315_v26 }
  0x7d   : > { %v618_v34 = vpop.eup %617 }
  0x7e   : > { %v322_v35 = vmul.f32 0.6931472, %v618_v34 }
  0x80   : > { %v323_v36 = vsub.f32 %v322_v35, %v318_v33 }
  0x82   : > { %v324_v38 = vsel %vm319_vm0, %v323_v36, 0.0 }
  0x83   : > { %v325_v39 = vadd.f32 %v324_v38, %v320_v37 }
  0x85   : > { %326 = vst [vmem:[%s940_s4] sm:$0x3] %v325_v39 }
  0x86   : > { %714 = shalt.err (!%p711_p13)
}
  0x87   : > { %s715_s15 = scalar_lea.hbm %s350_s19, 32  ;;  %s719_s7 = scalar_lea.hbm %s1031_s2, 64 }
  0x88   : > { %p716_p3 = scmp.ne.s32.totalorder %s350_s19, %s715_s15  ;;  %p720_p2 = scmp.lt.s32.totalorder %s350_s19, %s1031_s2 }
  0x89   : > { %p721_p5 = scmp.lt.s32.totalorder %s719_s7, %s715_s15 }
  0x8a   : > { %p717_p8 = pnand %p716_p3, %p869_p9 }
  0x8b   : > { %p722_p6 = por %p721_p5, %p720_p2 }
  0x8c   : > { %p718_p0 = pneg %p717_p8 }
  0x8e   : > { %p723_p12 = pnand %p722_p6, %p718_p0 }
  0x90   : > { %726 = shalt.err (!%p723_p12)
}
  0x91   : > { %538 = dma.vmem_to_hbm [thread:$0]  (%p869_p9), %s353_s11, 32, %s350_s19, %s333_s21  }
  0x92 PF: > { %s378_s0 = sand.u32 1, %s769_s12   ;;  %p1041_p4 = scmp.ge.s32.totalorder %s789_s17, 2 }
  0x93   : > { %s379_s9 = scalar_lea.sflag [#allocation4], %s378_s0 }
  0x94   : > { %p550_p7 = pnand %p1041_p4, %p876_p11 }
  0x96   : > { %p551_p1 = pneg %p550_p7 }
  0x98   : > { %760 = dma.done.wait (%p551_p1), %s379_s9, 32  }
  0x99   : > { %762 = vsyncadd (%p551_p1), %s379_s9, 4294967264  ;;  %s388_s30 = scalar_lea.sflag [#allocation9], %s378_s0 }
  0x9a   : > { %764 = dma.done.wait (%p551_p1), %s388_s30, 32  }
  0x9b   : > { %766 = vsyncadd (%p551_p1), %s388_s30, 4294967264  ;;  %s26_s17 = sadd.s32 1, %s789_s17   ;;  %s1042_s12 = smov %s773_s13 }
  0x9c   : > { %p23_p12 = scmp.ge.s32.totalorder %s26_s17, 4   ;;  %s1043_s13 = smov %s777_s14 }
  0x9d   : > { %s1044_s14 = smov %s874_s26  ;;  %s1045_s15 = smov %s785_s16 }
  0x9e   : > { %s1046_s16 = smov %s1048_s20  ;;  %25 = sbr.rel (!%p23_p12) target bundleno = 12 (0xc), region = 110 }
  0xa3   :  { %393 = vsyncpa [#allocation3], 1 }
  0xa4   :  { %395 = vsyncpa [#allocation3 + $0x1], 1 }
  0xa5   :  { %396 = vsyncpa [#allocation6], 1 }
  0xa6   :  { %398 = vsyncpa [#allocation6 + $0x1], 1 }
  0xa7   :  { %399 = vsyncpa [#allocation4], 1 }
  0xa8   :  { %401 = vsyncpa [#allocation4 + $0x1], 1 }
  0xa9   :  { %402 = vsyncpa [#allocation9], 1 }
  0xaa   :  { %404 = vsyncpa [#allocation9 + $0x1], 1 }

</bundles_post_ra>
